<compile_context>
chip_gen: v7x
topology: tpu7x:2x2x1
jax: 0.10.0
libtpu: 0.0.40
codegen_flags: <defaults>
</compile_context>

<pallas_src>
import functools

import jax
import jax.numpy as jnp
from jax.experimental import pallas as pl
from jax.experimental.pallas import tpu as pltpu


def _round_up(x, m):
    return (x + m - 1) // m * m


def _chip_defaults():
    """(tm, th, vmem_limit_bytes, want_two_row_tiles) derived from the chip's VMEM size."""
    vmem_cap = 128 * 1024 * 1024
    try:
        info = pltpu.get_tpu_info()
        vmem_cap = int(getattr(info, "vmem_capacity_bytes", vmem_cap))
    except Exception:
        pass
    if vmem_cap <= 64 * 1024 * 1024:
        # v7x-like: 64 MiB VMEM per TensorCore, 2 TCs, very fast HBM.
        return 512, 512, 48 * 1024 * 1024, True
    # v5e / v6e: 128 MiB VMEM, single TensorCore.
    return 768, 1024, 100 * 1024 * 1024, False


def ffn_kernel(x_ref, w1_ref, b1_ref, w2_ref, b2_ref, o_ref, xhat_ref, *acc,
               d_in, d_pad, matmul_dtype):
    """Grid = (row_tiles, hidden_chunks).  Hidden axis is a reduction ('arbitrary').

    `acc` holds the (tm, Dp) f32 accumulator scratch; it is omitted when there is a
    single hidden chunk (fused epilogue, no accumulator round-trip)."""
    h_idx = pl.program_id(1)
    n_h = pl.num_programs(1)

    # --- first hidden chunk: LayerNorm the row tile once (two-pass variance) ---
    @pl.when(h_idx == 0)
    def _():
        x = x_ref[...].astype(jnp.float32)              # (tm, Dp); padded cols are 0
        inv_d = 1.0 / d_in
        mean = jnp.sum(x, axis=-1, keepdims=True) * inv_d
        centered = x - mean
        # Each of the (d_pad - d_in) zero-padded columns contributes mean^2 to the
        # centered sum of squares; subtract it so the variance matches nn.LayerNorm.
        sq = jnp.sum(centered * centered, axis=-1, keepdims=True)
        var = (sq - (d_pad - d_in) * (mean * mean)) * inv_d
        inv = jax.lax.rsqrt(var + 1e-6)                 # eps matches nn.LayerNorm(d_in, eps=1e-06)
        # gamma/beta are already folded into W1/b1; padded xhat columns are killed by
        # the zero-padded W1 rows.  Stored once in matmul_dtype (no per-chunk cast).
        xhat_ref[...] = (centered * inv).astype(xhat_ref.dtype)

    # --- hidden chunk: relu(xhat @ W1[:, chunk] + b1[chunk]) @ W2[chunk, :] ---
    h = jnp.dot(xhat_ref[...], w1_ref[...],
                preferred_element_type=jnp.float32) + b1_ref[...]
    h = jnp.maximum(h, 0.0)
    contrib = jnp.dot(h.astype(matmul_dtype), w2_ref[...],
                      preferred_element_type=jnp.float32)

    if not acc:
        # Single hidden chunk: fused bias + residual epilogue, no accumulator.
        y = contrib + b2_ref[...] + x_ref[...].astype(jnp.float32)
        o_ref[...] = y.astype(o_ref.dtype)              # dropout: eval-mode identity
    else:
        acc_ref = acc[0]

        @pl.when(h_idx == 0)
        def _():
            acc_ref[...] = contrib                      # no zero-init + read-modify-write pass

        @pl.when(h_idx > 0)
        def _():
            acc_ref[...] += contrib

        @pl.when(h_idx == n_h - 1)
        def _():
            y = acc_ref[...] + b2_ref[...] + x_ref[...].astype(jnp.float32)
            o_ref[...] = y.astype(o_ref.dtype)          # dropout: eval-mode identity


def prepare_ffn(gamma, beta, w1, b1, w2, b2, *, matmul_dtype=jnp.bfloat16,
                tm=None, th=None, vmem_limit_bytes=None):
    """One-time parameter prep: fold LayerNorm affine into W1/b1, zero-pad to lane-dense
    multiples of 128, and pre-cast weights to matmul_dtype.  Call once, reuse across steps."""
    D, H = w1.shape
    tm_d, th_d, vmem_d, two_tiles = _chip_defaults()
    if vmem_limit_bytes is None:
        vmem_limit_bytes = vmem_d
    w_bytes = jnp.dtype(matmul_dtype).itemsize

    Dp = _round_up(D, 128)
    Hp128 = _round_up(H, 128)
    if th is None:
        # Collapse the hidden axis when both padded weights fit comfortably in VMEM:
        # W1/W2 then stream from HBM exactly once instead of once per row tile.
        if 2 * Dp * Hp128 * w_bytes <= 12 * 1024 * 1024:
            th = Hp128
        else:
            th = min(th_d, Hp128)
    th = _round_up(min(th, Hp128), 128)
    Hp = _round_up(H, th)   # multiple of th -> the grid never drops a hidden chunk

    # Fold LayerNorm affine into the first linear:
    #   (xhat*gamma + beta) @ W1 + b1 == xhat @ (gamma[:,None]*W1) + (beta @ W1 + b1)
    g = gamma.reshape(D).astype(jnp.float32)
    be = beta.reshape(D).astype(jnp.float32)
    w1f = g[:, None] * w1.astype(jnp.float32)
    b1f = be[None, :] @ w1.astype(jnp.float32) + b1.reshape(1, H).astype(jnp.float32)

    def pad2(a, shape, dtype):
        a = a.astype(dtype)
        if a.shape == shape:
            return a
        return jnp.zeros(shape, dtype).at[:a.shape[0], :a.shape[1]].set(a)

    w1p = pad2(w1f, (Dp, Hp), matmul_dtype)
    w2p = pad2(w2.astype(jnp.float32), (Hp, Dp), matmul_dtype)
    b1p = pad2(b1f, (1, Hp), jnp.float32)                       # biases stay f32 (added to f32 acc)
    b2p = pad2(b2.reshape(1, D).astype(jnp.float32), (1, Dp), jnp.float32)

    cfg = dict(d_in=D, d_pad=Dp, h_pad=Hp, th=th, tm=tm, tm_default=tm_d,
               two_row_tiles=two_tiles, matmul_dtype=matmul_dtype,
               vmem_limit_bytes=vmem_limit_bytes)
    return (w1p, b1p, w2p, b2p), cfg


def ffn_apply(x, params, cfg):
    """x: [B, S, D] -> [B, S, D].  params/cfg come from prepare_ffn (reusable across calls)."""
    w1p, b1p, w2p, b2p = params
    B, S, D = x.shape
    assert D == cfg["d_in"]
    Dp, Hp, th = cfg["d_pad"], cfg["h_pad"], cfg["th"]
    mm_dtype = cfg["matmul_dtype"]
    N = B * S

    # --- row tile selection ---
    tm = cfg["tm"] if cfg["tm"] is not None else cfg["tm_default"]
    tm = min(tm, _round_up(N, 16))                    # bf16 sublane packing -> multiples of 16
    if cfg["two_row_tiles"] and N >= 256:
        # v7x: keep >= 2 row tiles so both TensorCores get work on the parallel row axis.
        tm = min(tm, _round_up((N + 1) // 2, 128))

    def vmem_est(tm_):
        x_b = jnp.dtype(x.dtype).itemsize
        w_b = jnp.dtype(mm_dtype).itemsize
        est = 2 * tm_ * Dp * x_b                       # x tile (double-buffered)
        est += 2 * tm_ * Dp * x_b                      # out tile
        est += 2 * (Dp * th + th * Dp) * w_b           # W1/W2 chunks (double-buffered)
        est += tm_ * Dp * w_b                          # xhat scratch
        if Hp // th > 1:
            est += tm_ * Dp * 4                        # f32 accumulator
        return est

    while tm > 64 and vmem_est(tm) > 0.9 * cfg["vmem_limit_bytes"]:
        tm = _round_up(tm // 2, 16)

    Np = _round_up(N, tm)
    n_h = Hp // th

    # --- activations: only pad/copy when the layout actually needs it ---
    x2d = x.reshape(N, D)
    if (Np, Dp) != (N, D):
        x2d = jnp.zeros((Np, Dp), x.dtype).at[:N, :D].set(x2d)

    kernel = functools.partial(ffn_kernel, d_in=D, d_pad=Dp, matmul_dtype=mm_dtype)

    scratch = [pltpu.VMEM((tm, Dp), mm_dtype)]         # xhat (cast once per row tile)
    if n_h > 1:
        scratch.append(pltpu.VMEM((tm, Dp), jnp.float32))   # f32 accumulator

    out = pl.pallas_call(
        kernel,
        out_shape=jax.ShapeDtypeStruct((Np, Dp), x.dtype),
        grid_spec=pltpu.PrefetchScalarGridSpec(
            num_scalar_prefetch=0,
            grid=(Np // tm, n_h),
            in_specs=[
                pl.BlockSpec((tm, Dp), lambda i, h: (i, 0)),   # x tile (resident over h)
                pl.BlockSpec((Dp, th), lambda i, h: (0, h)),   # W1 hidden chunk (matmul_dtype)
                pl.BlockSpec((1, th), lambda i, h: (0, h)),    # b1 chunk (f32)
                pl.BlockSpec((th, Dp), lambda i, h: (h, 0)),   # W2 hidden chunk (matmul_dtype)
                pl.BlockSpec((1, Dp), lambda i, h: (0, 0)),    # b2 (f32)
            ],
            out_specs=pl.BlockSpec((tm, Dp), lambda i, h: (i, 0)),
            scratch_shapes=scratch,
        ),
        compiler_params=pltpu.CompilerParams(
            dimension_semantics=("parallel", "arbitrary"),
            vmem_limit_bytes=cfg["vmem_limit_bytes"],
        ),
    )(x2d, w1p, b1p, w2p, b2p)

    if (Np, Dp) != (N, D):
        out = out[:N, :D]
    return out.reshape(B, S, D)


def positionwise_feed_forward(x, gamma, beta, w1, b1, w2, b2, **kwargs):
    """Convenience one-shot wrapper.  For repeated calls, hoist prepare_ffn() out."""
    params, cfg = prepare_ffn(gamma, beta, w1, b1, w2, b2, **kwargs)
    return ffn_apply(x, params, cfg)


def reference(x, gamma, beta, w1, b1, w2, b2):
    residual = x
    mean = jnp.mean(x, axis=-1, keepdims=True)
    var = jnp.mean((x - mean) ** 2, axis=-1, keepdims=True)
    xn = (x - mean) * jax.lax.rsqrt(var + 1e-6) * gamma[0] + beta[0]
    h = jnp.maximum(xn @ w1 + b1[0], 0.0)
    y = h @ w2 + b2[0]
    return y + residual


if __name__ == "__main__":
    key = jax.random.PRNGKey(0)
    B, S, d_in, d_hid = 2, 8, 32, 64

    k_x, k_w1, k_b1, k_w2, k_b2, k_g, k_be = jax.random.split(key, 7)
    x = jax.random.normal(k_x, (B, S, d_in), dtype=jnp.float32)

    # Deterministic parameter init (Linear-like fan-in scaling).
    w1 = jax.random.normal(k_w1, (d_in, d_hid), dtype=jnp.float32) / jnp.sqrt(d_in)
    b1 = jax.random.normal(k_b1, (1, d_hid), dtype=jnp.float32) * 0.01
    w2 = jax.random.normal(k_w2, (d_hid, d_in), dtype=jnp.float32) / jnp.sqrt(d_hid)
    b2 = jax.random.normal(k_b2, (1, d_in), dtype=jnp.float32) * 0.01
    # Non-trivial LayerNorm affine so the gamma/beta folding path is exercised.
    gamma = 1.0 + 0.1 * jax.random.normal(k_g, (1, d_in), dtype=jnp.float32)
    beta = 0.1 * jax.random.normal(k_be, (1, d_in), dtype=jnp.float32)

    ref = reference(x, gamma, beta, w1, b1, w2, b2)

    # f32 matmul path: tight tolerance vs the f32 reference.
    out_f32 = positionwise_feed_forward(x, gamma, beta, w1, b1, w2, b2,
                                        matmul_dtype=jnp.float32)
    out_f32 = jax.block_until_ready(out_f32)
    assert out_f32.shape == x.shape
    assert jnp.allclose(out_f32, ref, atol=1e-4, rtol=1e-4), "f32 path mismatch vs reference"

    # Default path: bf16 matmul inputs, f32 accumulation (native MXU rate on all gens).
    out_bf16 = positionwise_feed_forward(x, gamma, beta, w1, b1, w2, b2)
    out_bf16 = jax.block_until_ready(out_bf16)
    assert out_bf16.shape == x.shape
    assert jnp.allclose(out_bf16, ref, atol=5e-2, rtol=5e-2), "bf16 path mismatch vs reference"

    print("KERNEL_OK")
</pallas_src>

<mosaic_0001>
module attributes {stable_mosaic.version = 11 : i64} {
  func.func @ffn_kernel(%arg0: i32, %arg1: i32, %arg2: memref<16x128xf32, #tpu.memory_space<vmem>>, %arg3: memref<128x128xf32, #tpu.memory_space<vmem>>, %arg4: memref<1x128xf32, #tpu.memory_space<vmem>>, %arg5: memref<128x128xf32, #tpu.memory_space<vmem>>, %arg6: memref<1x128xf32, #tpu.memory_space<vmem>>, %arg7: memref<16x128xf32, #tpu.memory_space<vmem>>, %arg8: memref<16x128xf32, #tpu.memory_space<vmem>>) attributes {dimension_semantics = [#tpu.dimension_semantics<parallel>, #tpu.dimension_semantics<arbitrary>], iteration_bounds = array<i64: 1, 1>, scalar_prefetch = 0 : i64, scratch_operands = 1 : i64, tpu.core_type = #tpu.core_type<tc>, window_params = [{transform_indices = @transform_0, window_bounds = array<i64: 16, 128>}, {transform_indices = @transform_1, window_bounds = array<i64: 128, 128>}, {transform_indices = @transform_2, window_bounds = array<i64: 1, 128>}, {transform_indices = @transform_3, window_bounds = array<i64: 128, 128>}, {pipeline_mode = #tpu.pipeline_mode<synchronous>, transform_indices = @transform_4, window_bounds = array<i64: 1, 128>}, {transform_indices = @transform_5, window_bounds = array<i64: 16, 128>}]} {
    %c0_i32 = arith.constant 0 : i32
    %0 = arith.cmpi eq, %arg1, %c0_i32 : i32
    %1 = arith.extui %0 : i1 to i32
    %c0_i32_0 = arith.constant 0 : i32
    %2 = arith.cmpi ne, %1, %c0_i32_0 : i32
    scf.if %2 {
      %c0_16 = arith.constant 0 : index
      %c0_17 = arith.constant 0 : index
      %19 = vector.load %arg2[%c0_16, %c0_17] : memref<16x128xf32, #tpu.memory_space<vmem>>, vector<16x128xf32>
      %cst_18 = arith.constant dense<0.000000e+00> : vector<16xf32>
      %20 = vector.multi_reduction <add>, %19, %cst_18 [1] : vector<16x128xf32> to vector<16xf32>
      %21 = vector.shape_cast %20 : vector<16xf32> to vector<16x1xf32>
      %cst_19 = arith.constant 3.125000e-02 : f32
      %22 = vector.broadcast %cst_19 : f32 to vector<16x1xf32>
      %23 = arith.mulf %21, %22 : vector<16x1xf32>
      %24 = vector.broadcast %23 : vector<16x1xf32> to vector<16x128xf32>
      %25 = arith.subf %19, %24 : vector<16x128xf32>
      %26 = arith.mulf %25, %25 : vector<16x128xf32>
      %cst_20 = arith.constant dense<0.000000e+00> : vector<16xf32>
      %27 = vector.multi_reduction <add>, %26, %cst_20 [1] : vector<16x128xf32> to vector<16xf32>
      %28 = vector.shape_cast %27 : vector<16xf32> to vector<16x1xf32>
      %29 = arith.mulf %23, %23 : vector<16x1xf32>
      %cst_21 = arith.constant 9.600000e+01 : f32
      %30 = vector.broadcast %cst_21 : f32 to vector<16x1xf32>
      %31 = arith.mulf %30, %29 : vector<16x1xf32>
      %32 = arith.subf %28, %31 : vector<16x1xf32>
      %cst_22 = arith.constant 3.125000e-02 : f32
      %33 = vector.broadcast %cst_22 : f32 to vector<16x1xf32>
      %34 = arith.mulf %32, %33 : vector<16x1xf32>
      %cst_23 = arith.constant 9.99999997E-7 : f32
      %35 = vector.broadcast %cst_23 : f32 to vector<16x1xf32>
      %36 = arith.addf %34, %35 : vector<16x1xf32>
      %37 = math.rsqrt %36 : vector<16x1xf32>
      %38 = vector.broadcast %37 : vector<16x1xf32> to vector<16x128xf32>
      %39 = arith.mulf %25, %38 : vector<16x128xf32>
      %c0_24 = arith.constant 0 : index
      %c0_25 = arith.constant 0 : index
      %40 = vector.load %arg8[%c0_24, %c0_25] : memref<16x128xf32, #tpu.memory_space<vmem>>, vector<16x128xf32>
      tpu.vector_store %arg8[%c0_24, %c0_25], %39 {strides = array<i32>} : memref<16x128xf32, #tpu.memory_space<vmem>>, vector<16x128xf32>,
    } else {
    }
    %c0 = arith.constant 0 : index
    %c0_1 = arith.constant 0 : index
    %3 = vector.load %arg8[%c0, %c0_1] : memref<16x128xf32, #tpu.memory_space<vmem>>, vector<16x128xf32>
    %c0_2 = arith.constant 0 : index
    %c0_3 = arith.constant 0 : index
    %4 = vector.load %arg3[%c0_2, %c0_3] : memref<128x128xf32, #tpu.memory_space<vmem>>, vector<128x128xf32>
    %cst = arith.constant dense<0.000000e+00> : vector<16x128xf32>
    %5 = tpu.matmul %3, %4, %cst {dimension_numbers = #tpu.dot_dimension_numbers<[1], [0], [0], [1], [0, 0, 1, 1], [], []>} : vector<16x128xf32>, vector<128x128xf32>, vector<16x128xf32> -> vector<16x128xf32>
    %c0_4 = arith.constant 0 : index
    %c0_5 = arith.constant 0 : index
    %6 = vector.load %arg4[%c0_4, %c0_5] : memref<1x128xf32, #tpu.memory_space<vmem>>, vector<1x128xf32>
    %7 = vector.broadcast %6 : vector<1x128xf32> to vector<16x128xf32>
    %8 = arith.addf %5, %7 : vector<16x128xf32>
    %cst_6 = arith.constant 0.000000e+00 : f32
    %9 = vector.broadcast %cst_6 : f32 to vector<16x128xf32>
    %10 = arith.maximumf %8, %9 : vector<16x128xf32>
    %c0_7 = arith.constant 0 : index
    %c0_8 = arith.constant 0 : index
    %11 = vector.load %arg5[%c0_7, %c0_8] : memref<128x128xf32, #tpu.memory_space<vmem>>, vector<128x128xf32>
    %cst_9 = arith.constant dense<0.000000e+00> : vector<16x128xf32>
    %12 = tpu.matmul %10, %11, %cst_9 {dimension_numbers = #tpu.dot_dimension_numbers<[1], [0], [0], [1], [0, 0, 1, 1], [], []>} : vector<16x128xf32>, vector<128x128xf32>, vector<16x128xf32> -> vector<16x128xf32>
    %c0_10 = arith.constant 0 : index
    %c0_11 = arith.constant 0 : index
    %13 = vector.load %arg6[%c0_10, %c0_11] : memref<1x128xf32, #tpu.memory_space<vmem>>, vector<1x128xf32>
    %14 = vector.broadcast %13 : vector<1x128xf32> to vector<16x128xf32>
    %15 = arith.addf %12, %14 : vector<16x128xf32>
    %c0_12 = arith.constant 0 : index
    %c0_13 = arith.constant 0 : index
    %16 = vector.load %arg2[%c0_12, %c0_13] : memref<16x128xf32, #tpu.memory_space<vmem>>, vector<16x128xf32>
    %17 = arith.addf %15, %16 : vector<16x128xf32>
    %c0_14 = arith.constant 0 : index
    %c0_15 = arith.constant 0 : index
    %18 = vector.load %arg7[%c0_14, %c0_15] : memref<16x128xf32, #tpu.memory_space<vmem>>, vector<16x128xf32>
    tpu.vector_store %arg7[%c0_14, %c0_15], %17 {strides = array<i32>} : memref<16x128xf32, #tpu.memory_space<vmem>>, vector<16x128xf32>,
    return
  }
  func.func @transform_0(%arg0: i32, %arg1: i32) -> (i32, i32) {
    %c0_i32 = arith.constant 0 : i32
    %c0_i32_0 = arith.constant 0 : i32
    return %arg0, %c0_i32 : i32, i32
  }
  func.func @transform_1(%arg0: i32, %arg1: i32) -> (i32, i32) {
    %c0_i32 = arith.constant 0 : i32
    %c0_i32_0 = arith.constant 0 : i32
    return %c0_i32, %arg1 : i32, i32
  }
  func.func @transform_2(%arg0: i32, %arg1: i32) -> (i32, i32) {
    %c0_i32 = arith.constant 0 : i32
    %c0_i32_0 = arith.constant 0 : i32
    return %c0_i32, %arg1 : i32, i32
  }
  func.func @transform_3(%arg0: i32, %arg1: i32) -> (i32, i32) {
    %c0_i32 = arith.constant 0 : i32
    %c0_i32_0 = arith.constant 0 : i32
    return %arg1, %c0_i32 : i32, i32
  }
  func.func @transform_4(%arg0: i32, %arg1: i32) -> (i32, i32) {
    %c0_i32 = arith.constant 0 : i32
    %c0_i32_0 = arith.constant 0 : i32
    %c0_i32_1 = arith.constant 0 : i32
    return %c0_i32, %c0_i32_0 : i32, i32
  }
  func.func @transform_5(%arg0: i32, %arg1: i32) -> (i32, i32) {
    %c0_i32 = arith.constant 0 : i32
    %c0_i32_0 = arith.constant 0 : i32
    return %arg0, %c0_i32 : i32, i32
  }
}

</mosaic_0001>

<bundles_post_ra>
// kernel: tpu_custom_call.1
= control target key start
LH: loop header
LB: loop body
LE: loop exit
PB: predicated region body
PF: predicated region fallthrough
CT: control target
= control target key end

     0   :  { %10 = vsyncpa [#allocation4], 0  ;;  %s829_s0 = inlined_call_operand.hbm [shape: f32[16,128], index: 0, kind: input, shape index: {}]   ;;  %s830_s1 = inlined_call_operand.hbm [shape: f32[128,128], index: 1, kind: input, shape index: {}]   ;;  %s831_s2 = inlined_call_operand.hbm [shape: f32[1,128], index: 2, kind: input, shape index: {}]   ;;  %s832_s3 = inlined_call_operand.hbm [shape: f32[128,128], index: 3, kind: input, shape index: {}]   ;;  %s833_s4 = inlined_call_operand.hbm [shape: f32[1,128], index: 4, kind: input, shape index: {}]   ;;  %s834_s5 = inlined_call_operand.hbm [shape: f32[16,128], index: 5, kind: output, shape index: {}]  }
   0x1   :  { %11 = vsyncpa [#allocation7], 0 }
   0x2   :  { %12 = vsyncpa [#allocation10], 0 }
   0x3   :  { %13 = vsyncpa [#allocation5], 0  ;;  %s670_s18 = smov [#allocation6]   ;;  %s671_s20 = smov [#allocation9]  }
   0x4   :  { %s31_s19 = sshll.u32 %s670_s18, 4  ;;  %s53_s21 = sshll.u32 %s671_s20, 4  ;;  %s32_s19 = int_to_ptr.vmem [resolvable:$true] %s31_s19  ;;  %s708_s21 = int_to_ptr.vmem [resolvable:$true] %s53_s21 }
   0x5   :  { %s530_s24 = scalar_lea.hbm %s830_s1, 2048 }
   0x6   :  { %p531_p0 = scmp.ne.s32.totalorder %s830_s1, %s530_s24  ;;  %p534_p1 = scmp.lt.u32.totalorder %s530_s24, %s830_s1 }
   0x8   :  { %p536_p2 = pnand %p534_p1, %p531_p0 }
   0xa   :  { %539 = shalt.err (!%p536_p2)
}
   0xb   :  { %s540_s29 = scalar_lea.vmem %s32_s19, 2048  ;;  %p545_p4 = scmp.lt.s32.totalorder %s32_s19, %s32_s19 }
   0xc   :  { %p541_p3 = scmp.ne.s32.totalorder %s32_s19, %s540_s29  ;;  %p546_p5 = scmp.lt.s32.totalorder %s540_s29, %s540_s29 }
   0xe   :  { %p547_p6 = por %p546_p5, %p545_p4 }
  0x10   :  { %p548_p7 = pnand %p547_p6, %p541_p3 }
  0x12   :  { %551 = shalt.err (!%p548_p7)
}
  0x13   :  { %s672_s30 = smov 128   ;;  %s673_s6 = smov 8  }
  0x14   :  { %37 = dma.hbm_to_vmem [thread:$0]  %s830_s1, 2048, %s32_s19, [#allocation7], %s672_s30, %s672_s30, %s673_s6  }
  0x15   :  { %s552_s11 = scalar_lea.hbm %s832_s3, 2048 }
  0x16   :  { %p553_p8 = scmp.ne.s32.totalorder %s832_s3, %s552_s11  ;;  %p556_p9 = scmp.lt.u32.totalorder %s552_s11, %s832_s3 }
  0x18   :  { %p558_p10 = pnand %p556_p9, %p553_p8 }
  0x1a   :  { %561 = shalt.err (!%p558_p10)
}
  0x1b   :  { %s562_s16 = scalar_lea.vmem %s708_s21, 2048  ;;  %p567_p12 = scmp.lt.s32.totalorder %s708_s21, %s708_s21 }
  0x1c   :  { %p563_p11 = scmp.ne.s32.totalorder %s708_s21, %s562_s16  ;;  %p568_p13 = scmp.lt.s32.totalorder %s562_s16, %s562_s16 }
  0x1e   :  { %p569_p0 = por %p568_p13, %p567_p12 }
  0x20   :  { %p570_p1 = pnand %p569_p0, %p563_p11 }
  0x22   :  { %573 = shalt.err (!%p570_p1)
}
  0x23   :  { %59 = dma.hbm_to_vmem [thread:$0]  %s832_s3, 2048, %s708_s21, [#allocation10], %s672_s30, %s672_s30, %s673_s6  }
  0x24   :  { %s674_s18 = smov [#allocation3]   ;;  %s675_s20 = smov [#allocation8]  }
  0x25   :  { %s19_s19 = sshll.u32 %s674_s18, 4  ;;  %s44_s22 = sshll.u32 %s675_s20, 4  ;;  %s20_s19 = int_to_ptr.vmem [resolvable:$true] %s19_s19  ;;  %s45_s22 = int_to_ptr.vmem [resolvable:$true] %s44_s22 }
  0x26   :  { %s574_s25 = scalar_lea.hbm %s829_s0, 256 }
  0x27   :  { %p575_p2 = scmp.ne.s32.totalorder %s829_s0, %s574_s25  ;;  %p578_p3 = scmp.lt.u32.totalorder %s574_s25, %s829_s0 }
  0x29   :  { %p580_p4 = pnand %p578_p3, %p575_p2 }
  0x2b   :  { %583 = shalt.err (!%p580_p4)
}
  0x2c   :  { %s584_s3 = scalar_lea.vmem %s20_s19, 256  ;;  %p589_p6 = scmp.lt.s32.totalorder %s20_s19, %s20_s19 }
  0x2d   :  { %p585_p5 = scmp.ne.s32.totalorder %s20_s19, %s584_s3  ;;  %p590_p7 = scmp.lt.s32.totalorder %s584_s3, %s584_s3 }
  0x2f   :  { %p591_p8 = por %p590_p7, %p589_p6 }
  0x31   :  { %p592_p9 = pnand %p591_p8, %p585_p5 }
  0x33   :  { %595 = shalt.err (!%p592_p9)
}
  0x34   :  { %25 = dma.hbm_to_vmem [thread:$0]  %s829_s0, 256, %s20_s19, [#allocation4], %s672_s30, %s672_s30, %s673_s6  }
  0x35   :  { %s596_s10 = scalar_lea.hbm %s831_s2, 16 }
  0x36   :  { %p597_p10 = scmp.ne.s32.totalorder %s831_s2, %s596_s10  ;;  %p600_p11 = scmp.lt.u32.totalorder %s596_s10, %s831_s2 }
  0x38   :  { %p602_p12 = pnand %p600_p11, %p597_p10 }
  0x3a   :  { %605 = shalt.err (!%p602_p12)
}
  0x3b   :  { %s606_s15 = scalar_lea.vmem %s45_s22, 16  ;;  %s610_s16 = scalar_lea.vmem %s45_s22, 32 }
  0x3c   :  { %p607_p13 = scmp.ne.s32.totalorder %s45_s22, %s606_s15  ;;  %p611_p0 = scmp.lt.s32.totalorder %s45_s22, %s45_s22 }
  0x3d   :  { %p612_p1 = scmp.lt.s32.totalorder %s610_s16, %s606_s15 }
  0x3f   :  { %p613_p2 = por %p612_p1, %p611_p0 }
  0x41   :  { %p614_p3 = pnand %p613_p2, %p607_p13 }
  0x43   :  { %617 = shalt.err (!%p614_p3)
}
  0x44   :  { %47 = dma.hbm_to_vmem [thread:$0]  %s831_s2, 16, %s45_s22, [#allocation7]  }
  0x45   :  { %s676_s17 = smov [#allocation11]   ;;  %s618_s23 = scalar_lea.hbm %s833_s4, 16 }
  0x46   :  { %s66_s18 = sshll.u32 %s676_s17, 4  ;;  %p619_p4 = scmp.ne.s32.totalorder %s833_s4, %s618_s23  ;;  %s67_s18 = int_to_ptr.vmem [resolvable:$true] %s66_s18 }
  0x47   :  { %p622_p5 = scmp.lt.u32.totalorder %s618_s23, %s833_s4 }
  0x49   :  { %p624_p6 = pnand %p622_p5, %p619_p4 }
  0x4b   :  { %627 = shalt.err (!%p624_p6)
}
  0x4c   :  { %s628_s28 = scalar_lea.vmem %s67_s18, 16  ;;  %s632_s2 = scalar_lea.vmem %s67_s18, 32 }
  0x4d   :  { %p629_p7 = scmp.ne.s32.totalorder %s67_s18, %s628_s28  ;;  %p633_p8 = scmp.lt.s32.totalorder %s67_s18, %s67_s18 }
  0x4e   :  { %p634_p9 = scmp.lt.s32.totalorder %s632_s2, %s628_s28 }
  0x50   :  { %p635_p10 = por %p634_p9, %p633_p8 }
  0x52   :  { %p636_p11 = pnand %p635_p10, %p629_p7 }
  0x54   :  { %639 = shalt.err (!%p636_p11)
}
  0x55   :  { %69 = dma.hbm_to_vmem [thread:$0]  %s833_s4, 16, %s67_s18, [#allocation10]  }
  0x56   :  { %662 = dma.done.wait [#allocation4], 256  }
  0x57   :  { %663 = vsyncadd [#allocation4], 4294967040 }
  0x58   :  { %664 = dma.done.wait [#allocation7], 2064  }
  0x59   :  { %665 = vsyncadd [#allocation7], 4294965232 }
  0x5a   :  { %666 = dma.done.wait [#allocation10], 2064  }
  0x5b   :  { %667 = vsyncadd [#allocation10], 4294965232  ;;  %v784_v0 = vld [vmem:[#allocation3] sm:$0xff]  ;;  %v787_v1 = vld [vmem:[#allocation3 + $0x8] sm:$0xff]  ;;  %s677_s4 = smov [#allocation12]  }
  0x5c   :  { %91 = vadd.xlane.f32.xlu0 %v784_v0  ;;  %v123_v2 = vld [vmem:[#allocation6] sm:$0xff]  ;;  %v124_v3 = vld [vmem:[#allocation6 + $0x8] sm:$0xff]  ;;  %v125_v4 = vld [vmem:[#allocation6 + $0x10] sm:$0xff]  ;;  %s332_s3 = sshll.u32 %s677_s4, 4  ;;  %s333_s3 = int_to_ptr.vmem [resolvable:$true] %s332_s3 }
  0x5d   :  { %v454_v5 = vpack.c.bf16 %v124_v3, %v123_v2  ;;  %v126_v6 = vld [vmem:[#allocation6 + $0x18] sm:$0xff]  ;;  %v127_v8 = vld [vmem:[#allocation6 + $0x20] sm:$0xff]  ;;  %v128_v9 = vld [vmem:[#allocation6 + $0x28] sm:$0xff]  ;;  %s640_s21 = scalar_lea.vmem %s333_s3, 256  ;;  %p645_p13 = scmp.lt.s32.totalorder %s333_s3, %s333_s3 }
  0x5e   :  { %v458_v7 = vpack.c.bf16 %v126_v6, %v125_v4  ;;  %v462_v10 = vpack.c.bf16 %v128_v9, %v127_v8  ;;  %v129_v19 = vld [vmem:[#allocation6 + $0x30] sm:$0xff]  ;;  %v130_v20 = vld [vmem:[#allocation6 + $0x38] sm:$0xff]  ;;  %v131_v22 = vld [vmem:[#allocation6 + $0x40] sm:$0xff]  ;;  %p641_p12 = scmp.ne.s32.totalorder %s333_s3, %s640_s21  ;;  %p646_p0 = scmp.lt.s32.totalorder %s640_s21, %s640_s21 }
  0x5f   :  { %455 = vmatprep.subr.bf16.mxu0 %v454_v5  ;;  %v466_v21 = vpack.c.bf16 %v130_v20, %v129_v19  ;;  %v132_v23 = vld [vmem:[#allocation6 + $0x48] sm:$0xff]  ;;  %v133_v25 = vld [vmem:[#allocation6 + $0x50] sm:$0xff]  ;;  %v134_v26 = vld [vmem:[#allocation6 + $0x58] sm:$0xff] }
  0x60   :  { %93 = vadd.xlane.f32.xlu0 %v787_v1  ;;  %457 = vmatpush3.bf16.msra.mxu0 %v454_v5  ;;  %v470_v24 = vpack.c.bf16 %v132_v23, %v131_v22  ;;  %v474_v27 = vpack.c.bf16 %v134_v26, %v133_v25  ;;  %v135_v28 = vld [vmem:[#allocation6 + $0x60] sm:$0xff]  ;;  %v136_v29 = vld [vmem:[#allocation6 + $0x68] sm:$0xff]  ;;  %v137_v30 = vld [vmem:[#allocation6 + $0x70] sm:$0xff]  ;;  %p647_p1 = por %p646_p0, %p645_p13 }
  0x61   :  { %459 = vmatprep.subr.bf16.mxu0 %v458_v7  ;;  %v478_v31 = vpack.c.bf16 %v136_v29, %v135_v28  ;;  %v138_v32 = vld [vmem:[#allocation6 + $0x78] sm:$0xff]  ;;  %v223_v34 = vld [vmem:[#allocation9] sm:$0xff]  ;;  %v224_v35 = vld [vmem:[#allocation9 + $0x8] sm:$0xff] }
  0x62   :  { %v482_v33 = vpack.c.bf16 %v138_v32, %v137_v30  ;;  %v225_v36 = vld [vmem:[#allocation9 + $0x10] sm:$0xff]  ;;  %v486_v37 = vpack.c.bf16 %v224_v35, %v223_v34  ;;  %v226_v38 = vld [vmem:[#allocation9 + $0x18] sm:$0xff]  ;;  %v227_v40 = vld [vmem:[#allocation9 + $0x20] sm:$0xff]  ;;  %p648_p2 = pnand %p647_p1, %p641_p12 }
  0x63   :  { %v490_v39 = vpack.c.bf16 %v226_v38, %v225_v36  ;;  %v228_v41 = vld [vmem:[#allocation9 + $0x28] sm:$0xff]  ;;  %v229_v43 = vld [vmem:[#allocation9 + $0x30] sm:$0xff]  ;;  %v230_v44 = vld [vmem:[#allocation9 + $0x38] sm:$0xff] }
  0x64   :  { %461 = vmatpush3.bf16.msra.mxu0 %v458_v7  ;;  %487 = vmatprep.subr.bf16.mxu1 %v486_v37  ;;  %v494_v42 = vpack.c.bf16 %v228_v41, %v227_v40  ;;  %v498_v45 = vpack.c.bf16 %v230_v44, %v229_v43  ;;  %v231_v46 = vld [vmem:[#allocation9 + $0x40] sm:$0xff]  ;;  %v232_v47 = vld [vmem:[#allocation9 + $0x48] sm:$0xff]  ;;  %v233_v49 = vld [vmem:[#allocation9 + $0x50] sm:$0xff] }
  0x65   :  { %463 = vmatprep.subr.bf16.mxu0 %v462_v10  ;;  %489 = vmatpush3.bf16.msra.mxu1 %v486_v37  ;;  %v502_v48 = vpack.c.bf16 %v232_v47, %v231_v46  ;;  %v234_v50 = vld [vmem:[#allocation9 + $0x58] sm:$0xff]  ;;  %v235_v52 = vld [vmem:[#allocation9 + $0x60] sm:$0xff]  ;;  %v236_v53 = vld [vmem:[#allocation9 + $0x68] sm:$0xff] }
  0x66   :  { %491 = vmatprep.subr.bf16.mxu1 %v490_v39  ;;  %v506_v51 = vpack.c.bf16 %v234_v50, %v233_v49  ;;  %v510_v54 = vpack.c.bf16 %v236_v53, %v235_v52  ;;  %v237_v9 = vld [vmem:[#allocation9 + $0x70] sm:$0xff] }
  0x68   :  { %465 = vmatpush3.bf16.msra.mxu0 %v462_v10  ;;  %v238_v10 = vld [vmem:[#allocation9 + $0x78] sm:$0xff] }
  0x69   :  { %467 = vmatprep.subr.bf16.mxu0 %v466_v21  ;;  %493 = vmatpush3.bf16.msra.mxu1 %v490_v39 }
  0x6a   :  { %495 = vmatprep.subr.bf16.mxu1 %v494_v42 }
  0x6c   :  { %469 = vmatpush3.bf16.msra.mxu0 %v466_v21 }
  0x6d   :  { %471 = vmatprep.subr.bf16.mxu0 %v470_v24  ;;  %497 = vmatpush3.bf16.msra.mxu1 %v494_v42 }
  0x6e   :  { %499 = vmatprep.subr.bf16.mxu1 %v498_v45 }
  0x70   :  { %473 = vmatpush3.bf16.msra.mxu0 %v470_v24 }
  0x71   :  { %475 = vmatprep.subr.bf16.mxu0 %v474_v27  ;;  %501 = vmatpush3.bf16.msra.mxu1 %v498_v45 }
  0x72   :  { %503 = vmatprep.subr.bf16.mxu1 %v502_v48 }
  0x74   :  { %477 = vmatpush3.bf16.msra.mxu0 %v474_v27 }
  0x75   :  { %479 = vmatprep.subr.bf16.mxu0 %v478_v31  ;;  %505 = vmatpush3.bf16.msra.mxu1 %v502_v48 }
  0x76   :  { %507 = vmatprep.subr.bf16.mxu1 %v506_v51 }
  0x78   :  { %481 = vmatpush3.bf16.msra.mxu0 %v478_v31 }
  0x79   :  { %483 = vmatprep.subr.bf16.mxu0 %v482_v33  ;;  %509 = vmatpush3.bf16.msra.mxu1 %v506_v51 }
  0x7a   :  { %511 = vmatprep.subr.bf16.mxu1 %v510_v54 }
  0x7c   :  { %485 = vmatpush3.bf16.msra.mxu0 %v482_v33 }
  0x7d   :  { %513 = vmatpush3.bf16.msra.mxu1 %v510_v54 }
  0xe9   :  { %v92_v11 = vpop.xlane.xlu0 %91 }
  0xea   :  { %v790_v12 = vmul.f32 0.03125, %v92_v11  ;;  %v514_v11 = vpack.c.bf16 %v238_v10, %v237_v9 }
  0xec   :  { %v794_v13 = vsub.f32 %v784_v0, %v790_v12  ;;  %v105_v55 = vmul.f32 %v790_v12, %v790_v12  ;;  %515 = vmatprep.subr.bf16.mxu1 %v514_v11  ;;  %v346_v12 = vld [vmem:[#allocation8] ss:$0 sm:$0xff] }
  0xed   :  { %v94_v14 = vpop.xlane.xlu0 %93  ;;  %517 = vmatpush3.bf16.msra.mxu1 %v514_v11 }
  0xee   :  { %v796_v15 = vmul.f32 0.03125, %v94_v14  ;;  %v99_v16 = vmul.f32 %v794_v13, %v794_v13  ;;  %v107_v57 = vmul.f32 96.0, %v105_v55 }
  0xf0   :  { %v802_v17 = vsub.f32 %v787_v1, %v796_v15  ;;  %101 = vadd.xlane.f32.xlu1 %v99_v16  ;;  %v106_v56 = vmul.f32 %v796_v15, %v796_v15 }
  0xf2   :  { %v100_v18 = vmul.f32 %v802_v17, %v802_v17  ;;  %v108_v60 = vmul.f32 96.0, %v106_v56 }
  0xf4   :  { %103 = vadd.xlane.f32.xlu1 %v100_v18 }
 0x17d   :  { %v102_v58 = vpop.xlane.xlu1 %101 }
 0x17e   :  { %v109_v59 = vsub.f32 %v102_v58, %v107_v57 }
 0x180   :  { %v111_v61 = vmul.f32 0.03125, %v109_v59 }
 0x181   :  { %v104_v62 = vpop.xlane.xlu1 %103 }
 0x182   :  { %v113_v63 = vadd.f32 1e-06, %v111_v61  ;;  %v110_v2 = vsub.f32 %v104_v62, %v108_v60 }
 0x184   :  { %526 = vrsqrt.f32 %v113_v63  ;;  %v112_v3 = vmul.f32 0.03125, %v110_v2 }
 0x186   :  { %v114_v4 = vadd.f32 1e-06, %v112_v3 }
 0x188   :  { %528 = vrsqrt.f32 %v114_v4 }
 0x18e   :  { %v527_v5 = vpop.eup %526 }
 0x18f   :  { %v117_v6 = vmul.f32 %v527_v5, %v794_v13  ;;  %v347_v13 = vld [vmem:[#allocation11] ss:$0 sm:$0xff] }
 0x191   :  { %416 = vmatprep.mubr.f32.mxu0 %v117_v6 }
 0x192   :  { %v529_v7 = vpop.eup %528 }
 0x193   :  { %v118_v8 = vmul.f32 %v529_v7, %v802_v17 }
 0x195   :  { %417 = vmatmul.mubr.f32.vlgmr.msra.gmra.mrb[0].mxu0 %v118_v8 }
 0x268   :  { %v418_v14 = vpop.f32.mrb[0].mxu0 }
 0x269   :  { %v218_v15 = vadd.f32 %v418_v14, %v346_v12  ;;  %v212_v16 = vpop.f32.mrb[1].mxu0 }
 0x26a   :  { %v213_v18 = vadd.f32 %v346_v12, %v212_v16 }
 0x26b   :  { %v222_v20 = vmax.f32 %v218_v15, 0.0 }
 0x26c   :  { %v221_v19 = vmax.f32 %v213_v18, 0.0 }
 0x26e   :  { %451 = vmatprep.mubr.f32.mxu1 %v221_v19 }
 0x26f   :  { %452 = vmatmul.mubr.f32.vlgmr.msra.gmra.mrb[0].mxu1 %v222_v20 }
 0x342   :  { %v453_v21 = vpop.f32.mrb[0].mxu1 }
 0x343   :  { %v318_v22 = vadd.f32 %v453_v21, %v347_v13  ;;  %v312_v23 = vpop.f32.mrb[1].mxu1 }
 0x344   :  { %v313_v17 = vadd.f32 %v347_v13, %v312_v23 }
 0x345   :  { %v324_v24 = vadd.f32 %v318_v22, %v787_v1 }
 0x346   :  { %v323_v25 = vadd.f32 %v313_v17, %v784_v0 }
 0x347   :  { %326 = vst [vmem:[#allocation12 + $0x8] sm:$0xff] %v324_v24 }
 0x348   :  { %325 = vst [vmem:[#allocation12] sm:$0xff] %v323_v25 }
 0x349   :  { %651 = shalt.err (!%p648_p2)
}
 0x34a   :  { %s652_s9 = scalar_lea.hbm %s834_s5, 256 }
 0x34b   :  { %p653_p3 = scmp.ne.s32.totalorder %s834_s5, %s652_s9  ;;  %p656_p4 = scmp.lt.u32.totalorder %s652_s9, %s834_s5 }
 0x34d   :  { %p658_p5 = pnand %p656_p4, %p653_p3 }
 0x34f   :  { %661 = shalt.err (!%p658_p5)
}
 0x350   :  { %338 = dma.vmem_to_hbm [thread:$0]  %s333_s3, 256, %s834_s5, [#allocation5], %s672_s30, %s672_s30, %s673_s6  }
 0x351   :  { %668 = dma.done.wait [#allocation5], 256  }
 0x352   :  { %669 = vsyncadd [#allocation5], 4294967040 }
 0x353   :  { %342 = vsyncpa [#allocation4], 1 }
 0x354   :  { %343 = vsyncpa [#allocation7], 1 }
 0x355   :  { %344 = vsyncpa [#allocation10], 1 }
 0x356   :  { %345 = vsyncpa [#allocation5], 1 }

</bundles_post_ra>
